<compile_context>
chip_gen: v5e
topology: v5e:2x2
jax: 0.10.0
libtpu: 0.0.40
codegen_flags: <defaults>
</compile_context>

<pallas_src>
import jax
import jax.numpy as jnp
from jax.experimental import pallas as pl
from jax.experimental.pallas import tpu as pltpu


def _cheby_matmul_kernel(x_ref, g_ref, b_ref, o_ref):
    """One MXU matmul per (M-tile, N-tile): out = x @ g + bias.

    x_ref : (TM, CKN_pad)      im2col'd input tile (lane-dense, zero-padded)
    g_ref : (CKN_pad, TN)      folded Chebyshev x conv-weight operator tile
    b_ref : (1, TN)            bias broadcast over nodes (f32)
    o_ref : (TM, TN)           lane-dense output tile (f32)
    """
    acc = jnp.dot(x_ref[...], g_ref[...], preferred_element_type=jnp.float32)
    o_ref[...] = (acc + b_ref[...]).astype(o_ref.dtype)


def _round_up(x, m):
    return (x + m - 1) // m * m


def _choose_tm(m_total):
    # >=128-row MXU occupancy when M allows it, while keeping >=2 M-tiles so the
    # second TensorCore on v7x has work (on v5e/v6e the grid is just a serial loop,
    # so the extra tile only costs ~0.35us of pipeline overhead).
    if m_total >= 512:
        return 256
    if m_total >= 256:
        return 128
    if m_total >= 16:
        return _round_up((m_total + 1) // 2, 8)
    return 8


def fold_cheby_operator(adj, weight, bias, K, Kt, c_in, *, mxu_dtype=jnp.bfloat16):
    """x-independent folding: Chebyshev recursion + contraction with the conv weight.

    Returns (g2t_pad, bias_row) for `t_cheby_conv_apply`.  This only depends on
    (adj, weight, bias), so cache it across forward calls and recompute on weight
    update — it must not sit on the per-forward hot path.
    """
    nNode = adj.shape[0]
    c_out = weight.shape[0]
    if K < 2:
        # The PyTorch module always stacks [I, adj], so K < 2 is inconsistent with
        # its Conv2d(K*c_in, ...) and would fail there too.
        raise ValueError("T_cheby_conv requires K >= 2")

    dtype = weight.dtype
    L0 = jnp.eye(nNode, dtype=dtype)
    L1 = adj.astype(dtype)
    Ls = [L0, L1]
    for _ in range(2, K):
        L2 = 2.0 * (adj @ L1) - L0
        L0, L1 = L1, L2
        Ls.append(L2)
    cheb = jnp.stack(Ls, axis=0)                       # (K, nNode, nNode); cheb[k, q, n]

    # G[o, c, kt, q, n] = sum_k weight[o, c*K + k, kt] * cheb[k, q, n]
    Wr = weight.reshape(c_out, c_in, K, Kt)
    G = jnp.einsum('ocka,kqn->ocaqn', Wr, cheb)        # (c_out, c_in, Kt, q, n)
    CKN = c_in * Kt * nNode
    ON = c_out * nNode
    g2t = G.transpose(1, 2, 4, 0, 3).reshape(CKN, ON)  # rows (c,kt,n), cols (o,q)

    CKN_pad = _round_up(CKN, 128)   # contraction/lane alignment (192 -> 256)
    ON_pad = _round_up(ON, 128)     # lane-dense output stores (full-lane vst)

    if mxu_dtype is not None:
        g2t = g2t.astype(mxu_dtype)
    g2t_pad = jnp.pad(g2t, ((0, CKN_pad - CKN), (0, ON_pad - ON)))

    bias_row = jnp.repeat(bias.astype(jnp.float32), nNode)      # col index o*nNode + q
    bias_row = jnp.pad(bias_row, (0, ON_pad - ON))[None, :]     # (1, ON_pad) f32
    return g2t_pad, bias_row


def t_cheby_conv_apply(x, g2t_pad, bias_row, K, Kt, c_out, *, mxu_dtype=jnp.bfloat16):
    """Forward pass given a pre-folded operator. Returns (B, c_out, nNode, Lout)."""
    B, c_in, nNode, length = x.shape
    pad = 1                                    # Conv2d padding=(0, 1)
    Lout = length + 2 * pad - Kt + 1
    CKN = c_in * Kt * nNode
    ON = c_out * nNode
    CKN_pad, ON_pad = g2t_pad.shape

    # im2col with (c, kt, n) folded into the lane dim; batch folded into M.
    # TODO(synk): for large `length`/`c_in`, drop this host-side im2col and instead
    # accumulate Kt shifted matmuls inside the kernel (ref[pl.ds(kt, Lout)] with
    # pl.multiple_of) to cut input HBM traffic ~Kt-fold; at these sizes the single
    # fused matmul is strictly better.
    x_pad = jnp.pad(x, ((0, 0), (0, 0), (0, 0), (pad, pad)))      # (B, c_in, nNode, Lp)
    cols = [x_pad[..., kt:kt + Lout] for kt in range(Kt)]
    xc = jnp.stack(cols, axis=2)                                  # (B, c_in, Kt, nNode, Lout)
    xcol = xc.transpose(0, 4, 1, 2, 3).reshape(B * Lout, CKN)     # (B*Lout, CKN)

    if mxu_dtype is not None:      # bf16 MXU operands on v6e/v7x; f32 accumulation
        xcol = xcol.astype(mxu_dtype)

    M = B * Lout
    TM = _choose_tm(M)
    M_pad = _round_up(M, TM)
    num_m = M_pad // TM
    TN = ON_pad if ON_pad <= 1024 else 512     # tile the folded operator for large graphs
    num_n = ON_pad // TN

    xcol = jnp.pad(xcol, ((0, M_pad - M), (0, CKN_pad - CKN)))

    op_bytes = jnp.dtype(xcol.dtype).itemsize
    blk_bytes = (TM * CKN_pad + CKN_pad * TN) * op_bytes + (TN + TM * TN) * 4
    vmem_limit = int(max(16 * 2**20, min(64 * 2**20, 4 * blk_bytes + (2 << 20))))

    cost = pl.CostEstimate(
        flops=2 * M_pad * CKN_pad * ON_pad,
        transcendentals=0,
        bytes_accessed=(xcol.size * op_bytes + g2t_pad.size * op_bytes
                        + bias_row.size * 4 + M_pad * ON_pad * 4),
    )

    out_flat = pl.pallas_call(
        _cheby_matmul_kernel,
        out_shape=jax.ShapeDtypeStruct((M_pad, ON_pad), jnp.float32),
        grid_spec=pl.GridSpec(
            grid=(num_m, num_n),
            in_specs=[
                pl.BlockSpec((TM, CKN_pad), lambda i, j: (i, 0)),
                pl.BlockSpec((CKN_pad, TN), lambda i, j: (0, j)),
                pl.BlockSpec((1, TN), lambda i, j: (0, j)),
            ],
            out_specs=pl.BlockSpec((TM, TN), lambda i, j: (i, j)),
        ),
        compiler_params=pltpu.CompilerParams(
            dimension_semantics=("parallel", "parallel"),
            vmem_limit_bytes=vmem_limit,
        ),
        cost_estimate=cost,
    )(xcol, g2t_pad, bias_row)

    # Layout plumbing back to NCHW-style (B, c_out, nNode, Lout) — outside the kernel.
    out = out_flat[:M, :ON].reshape(B, Lout, c_out, nNode)
    return out.transpose(0, 2, 3, 1).astype(x.dtype)


def t_cheby_conv(x, adj, weight, bias, K, Kt, *, mxu_dtype=jnp.bfloat16):
    """Convenience wrapper: fold operator + apply.

    x      : (B, c_in, nNode, length)  float32
    adj    : (nNode, nNode)            float32
    weight : (c_out, c_in*K, Kt)       Conv2d weight with the height(=1) dim squeezed
    bias   : (c_out,)
    """
    c_in = x.shape[1]
    c_out = weight.shape[0]
    g2t_pad, bias_row = fold_cheby_operator(adj, weight, bias, K, Kt, c_in,
                                            mxu_dtype=mxu_dtype)
    return t_cheby_conv_apply(x, g2t_pad, bias_row, K, Kt, c_out, mxu_dtype=mxu_dtype)


def t_cheby_conv_ref(x, adj, weight, bias, K, Kt):
    """Pure-JAX replica of the PyTorch forward (for verification)."""
    B, c_in, nNode, length = x.shape
    L0 = jnp.eye(nNode, dtype=x.dtype)
    L1 = adj
    Ls = [L0, L1]
    for _ in range(2, K):
        L2 = 2.0 * (adj @ L1) - L0
        L0, L1 = L1, L2
        Ls.append(L2)
    Lap = jnp.stack(Ls, axis=0).transpose(0, 2, 1)          # matches .transpose(-1,-2)
    xk = jnp.einsum('bcnl,knq->bckql', x, Lap)
    xk = xk.reshape(B, c_in * K, nNode, length)
    out = jax.lax.conv_general_dilated(
        xk, weight[:, :, None, :],                           # OIHW, H=1
        window_strides=(1, 1), padding=((0, 0), (1, 1)),
        dimension_numbers=('NCHW', 'OIHW', 'NCHW'))
    return out + bias[None, :, None, None]


if __name__ == "__main__":
    B, c_in, nNode, length = 2, 4, 16, 16
    K, Kt, c_out = 3, 3, 8

    key = jax.random.PRNGKey(0)
    kx, ka, kw, kb = jax.random.split(key, 4)
    x = jax.random.normal(kx, (B, c_in, nNode, length), jnp.float32)
    adj = jax.random.normal(ka, (nNode, nNode), jnp.float32) * 0.1
    weight = jax.random.normal(kw, (c_out, c_in * K, Kt), jnp.float32) * 0.1
    bias = jax.random.normal(kb, (c_out,), jnp.float32) * 0.1

    Lout = length + 2 - Kt + 1
    ref = jax.block_until_ready(t_cheby_conv_ref(x, adj, weight, bias, K, Kt))

    # f32 MXU operands: checks the folded-operator math against the reference.
    out_f32 = jax.block_until_ready(
        t_cheby_conv(x, adj, weight, bias, K, Kt, mxu_dtype=None))
    assert out_f32.shape == (B, c_out, nNode, Lout), out_f32.shape
    if not jnp.allclose(out_f32, ref, atol=2e-2, rtol=2e-2):
        raise AssertionError(
            f"f32 mismatch vs reference, max abs err = {jnp.max(jnp.abs(out_f32 - ref))}")

    # Default path: bf16 MXU operands with f32 accumulation (looser tolerance).
    out_bf16 = jax.block_until_ready(t_cheby_conv(x, adj, weight, bias, K, Kt))
    assert out_bf16.shape == (B, c_out, nNode, Lout), out_bf16.shape
    if not jnp.allclose(out_bf16, ref, atol=5e-2, rtol=5e-2):
        raise AssertionError(
            f"bf16 mismatch vs reference, max abs err = {jnp.max(jnp.abs(out_bf16 - ref))}")

    print("KERNEL_OK")
</pallas_src>

<mosaic_0001>
module attributes {stable_mosaic.version = 11 : i64} {
  func.func @_cheby_matmul_kernel(%arg0: i32, %arg1: i32, %arg2: memref<16x256xf32, #tpu.memory_space<vmem>>, %arg3: memref<256x128xf32, #tpu.memory_space<vmem>>, %arg4: memref<1x128xf32, #tpu.memory_space<vmem>>, %arg5: memref<16x128xf32, #tpu.memory_space<vmem>>) attributes {dimension_semantics = [#tpu.dimension_semantics<parallel>, #tpu.dimension_semantics<parallel>], iteration_bounds = array<i64: 2, 1>, scalar_prefetch = 0 : i64, scratch_operands = 0 : i64, tpu.core_type = #tpu.core_type<tc>, window_params = [{transform_indices = @transform_0, window_bounds = array<i64: 16, 256>}, {transform_indices = @transform_1, window_bounds = array<i64: 256, 128>}, {transform_indices = @transform_2, window_bounds = array<i64: 1, 128>}, {transform_indices = @transform_3, window_bounds = array<i64: 16, 128>}]} {
    %c0 = arith.constant 0 : index
    %c0_0 = arith.constant 0 : index
    %0 = vector.load %arg2[%c0, %c0_0] : memref<16x256xf32, #tpu.memory_space<vmem>>, vector<16x256xf32>
    %c0_1 = arith.constant 0 : index
    %c0_2 = arith.constant 0 : index
    %1 = vector.load %arg3[%c0_1, %c0_2] : memref<256x128xf32, #tpu.memory_space<vmem>>, vector<256x128xf32>
    %cst = arith.constant dense<0.000000e+00> : vector<16x128xf32>
    %2 = tpu.matmul %0, %1, %cst {dimension_numbers = #tpu.dot_dimension_numbers<[1], [0], [0], [1], [0, 0, 1, 1], [], []>} : vector<16x256xf32>, vector<256x128xf32>, vector<16x128xf32> -> vector<16x128xf32>
    %c0_3 = arith.constant 0 : index
    %c0_4 = arith.constant 0 : index
    %3 = vector.load %arg4[%c0_3, %c0_4] : memref<1x128xf32, #tpu.memory_space<vmem>>, vector<1x128xf32>
    %4 = vector.broadcast %3 : vector<1x128xf32> to vector<16x128xf32>
    %5 = arith.addf %2, %4 : vector<16x128xf32>
    %c0_5 = arith.constant 0 : index
    %c0_6 = arith.constant 0 : index
    %6 = vector.load %arg5[%c0_5, %c0_6] : memref<16x128xf32, #tpu.memory_space<vmem>>, vector<16x128xf32>
    tpu.vector_store %arg5[%c0_5, %c0_6], %5 {strides = array<i32>} : memref<16x128xf32, #tpu.memory_space<vmem>>, vector<16x128xf32>,
    return
  }
  func.func @transform_0(%arg0: i32, %arg1: i32) -> (i32, i32) {
    %c0_i32 = arith.constant 0 : i32
    %c0_i32_0 = arith.constant 0 : i32
    return %arg0, %c0_i32 : i32, i32
  }
  func.func @transform_1(%arg0: i32, %arg1: i32) -> (i32, i32) {
    %c0_i32 = arith.constant 0 : i32
    %c0_i32_0 = arith.constant 0 : i32
    return %c0_i32, %arg1 : i32, i32
  }
  func.func @transform_2(%arg0: i32, %arg1: i32) -> (i32, i32) {
    %c0_i32 = arith.constant 0 : i32
    %c0_i32_0 = arith.constant 0 : i32
    return %c0_i32, %arg1 : i32, i32
  }
  func.func @transform_3(%arg0: i32, %arg1: i32) -> (i32, i32) {
    %c0_i32 = arith.constant 0 : i32
    return %arg0, %arg1 : i32, i32
  }
}

</mosaic_0001>

<bundles_post_ra>
// kernel: tpu_custom_call.1
= control target key start
LH: loop header
LB: loop body
LE: loop exit
PB: predicated region body
PF: predicated region fallthrough
CT: control target
= control target key end

     0   :  { %s926_s0 = inlined_call_operand.hbm [shape: f32[32,256], index: 0, kind: input, shape index: {}]   ;;  %s927_s1 = inlined_call_operand.hbm [shape: f32[256,128], index: 1, kind: input, shape index: {}]   ;;  %s928_s2 = inlined_call_operand.vmem [shape: f32[1,128], index: 2, kind: input, shape index: {}]   ;;  %s929_s3 = inlined_call_operand.hbm [shape: f32[32,128], index: 3, kind: output, shape index: {}]  }
   0x1   :  { %930 = sst [smem:[#allocation11_spill]] %s927_s1 }
   0x2   :  { %8 = vsyncpa [#allocation3], 0 }
   0x3   :  { %10 = vsyncpa [#allocation3 + $0x1], 0 }
   0x4   :  { %11 = vsyncpa [#allocation6], 0 }
   0x5   :  { %12 = vsyncpa [#allocation4], 0 }
   0x6   :  { %14 = vsyncpa [#allocation4 + $0x1], 0  ;;  %s767_s12 = smov 0   ;;  %s769_s13 = smov 0  }
   0x7   :  { %s771_s14 = smov 0   ;;  %s773_s15 = smov 0  }
   0x8   :  { %s775_s16 = smov 0   ;;  %s777_s17 = smov 0  }
   0x9 LB: > { %s458_s18 = sadd.s32 4294967295, %s738_s17   ;;  %s459_s19 = sadd.s32 4294967294, %s738_s17   ;;  %s738_s17 = sphi %s777_s17, %s20_s17   ;;  %s734_s16 = sphi %s775_s16, %s943_s16   ;;  %s730_s15 = sphi %s773_s15, %s942_s15   ;;  %s726_s14 = sphi %s771_s14, %s941_s14   ;;  %s722_s13 = sphi %s769_s13, %s940_s13   ;;  %s718_s12 = sphi %s767_s12, %s939_s12  }
   0xa   : > { %p52_p0 = scmp.ne.s32.totalorder %s722_s13, %s718_s12  ;;  %p801_p1 = scmp.eq.s32.totalorder %s458_s18, 0 }
   0xb   : > { %p805_p2 = scmp.eq.s32.totalorder %s458_s18, 1  ;;  %p136_p3 = scmp.eq.s32.totalorder %s459_s19, 1 }
   0xc   : > { %p811_p4 = por %p801_p1, %p52_p0  ;;  %p460_p5 = scmp.ge.s32.totalorder %s738_s17, 1 }
   0xd   : > { %p816_p6 = por %p136_p3, %p52_p0  ;;  %p143_p7 = scmp.lt.s32.totalorder %s738_s17, 3 }
   0xe   : > { %s935_s1 = sld [smem:[#allocation11_spill]]  ;;  %s740_s28 = smov [#allocation5]  }
   0xf   : > { %p824_p8 = pnand %p460_p5, %p143_p7  ;;  %s158_s29 = sshll.u32 %s740_s28, 4  ;;  %s159_s29 = int_to_ptr.vmem [resolvable:$true] %s158_s29 }
  0x10   : > { %p463_p11 = scmp.ge.s32.totalorder %s738_s17, 2  ;;  %s741_s30 = smov 128  }
  0x11   : > { %p520_p9 = pneg %p824_p8  ;;  %s742_s4 = smov 8  }
  0x12   : > { %s32_s5 = sadd.s32 1, %s734_s16  ;;  %s39_s6 = sadd.s32 1, %s726_s14 }
  0x13   : > { %p521_p10 = pnand %p520_p9, %p801_p1  ;;  %p34_p12 = scmp.ge.s32.totalorder %s32_s5, 2 }
  0x14   : > { %s156_s26 = sshll.u32 %s935_s1, 4  ;;  %p46_p13 = scmp.ne.s32.totalorder %s726_s14, %s722_s13  ;;  %s157_s26 = int_to_ptr.hbm [resolvable:$true] %s156_s26 }
  0x15   : > { %523 = dma.hbm_to_vmem [thread:$0]  (!%p521_p10), %s157_s26, 4096, %s159_s29, [#allocation6], %s741_s30, %s741_s30, %s742_s4  }
  0x16   : > { %p47_p0 = scmp.eq.s32.totalorder %s738_s17, 0  ;;  %s945_s5 = smov (%p34_p12, %s32_s5), 0 }
  0x17   : > { %p846_p5 = por %p805_p2, %p46_p13  ;;  %s36_s9 = ssub.s32 %s734_s16, %s945_s5 }
  0x18   : > { %p840_p3 = por %p47_p0, %p46_p13  ;;  %p533_p7 = scmp.lt.s32.totalorder %s738_s17, 2 }
  0x19   : > { %p37_p9 = scmp.eq.s32.totalorder %s36_s9, 0  ;;  %s178_s10 = sand.u32 1, %s726_s14  }
  0x1a   : > { %s464_s11 = sshll.u32 %s178_s10, 5  ;;  %s478_s19 = sshll.u32 %s734_s16, 5 }
  0x1b   : > { %s855_s18 = scalar_select %p37_p9, %s726_s14, %s39_s6  }
  0x1c   : > { %s188_s26 = scalar_lea.hbm %s926_s0, %s478_s19  ;;  %s182_s28 = scalar_lea.vmem [#allocation2], %s464_s11 }
  0x1d   : > { %s191_s29 = sshll.u32 %s182_s28, 4  ;;  %s189_s21 = sshll.u32 %s188_s26, 4  ;;  %s192_s29 = int_to_ptr.vmem [resolvable:$true] %s191_s29  ;;  %s190_s21 = int_to_ptr.hbm [resolvable:$true] %s189_s21 }
  0x1e   : > { %p525_p2 = pnand %p533_p7, %p840_p3  ;;  %s179_s30 = scalar_lea.sflag [#allocation3], %s178_s10 }
  0x1f   : > { %s743_s4 = smov 256   ;;  %s744_s1 = smov 16  }
  0x20   : > { %527 = dma.hbm_to_vmem [thread:$0]  (!%p525_p2), %s190_s21, 512, %s192_s29, %s179_s30, %s743_s4, %s743_s4, %s744_s1  }
  0x21   : > { %203 = sbr.rel (%p824_p8) target bundleno = 213 (0xd5), region = 32  ;;  %s866_s6 = sand.u32 (!%p824_p8), 1, %s722_s13  }
  0x22   : > { %s469_s9 = sshll.u32 (!%p824_p8), %s866_s6, 5  ;;  %s206_s11 = scalar_lea.sflag (!%p824_p8), [#allocation3], %s866_s6 }
  0x23   : > { %s870_s19 = scalar_lea.vmem (!%p824_p8), [#allocation2], %s469_s9 }
  0x26   : > { %705 = dma.done.wait (%p811_p4), %s206_s11, 512  }
  0x27   : > { %707 = vsyncadd (%p811_p4), %s206_s11, 4294966784 }
  0x28   : > { %709 = dma.done.wait (%p801_p1), [#allocation6], 4096  }
  0x29   : > { %711 = vsyncadd (%p801_p1), [#allocation6], 4294963200  ;;  %v265_v0 = vld [vmem:[#allocation5 + $0x78] sm:$0xff]  ;;  %v264_v1 = vld [vmem:[#allocation5 + $0x70] sm:$0xff]  ;;  %s471_s1 = sshll.u32 %s866_s6, 4  ;;  %s479_s27 = sshll.u32 %s730_s15, 4 }
  0x2a   : > { %v281_v2 = vld [vmem:[#allocation5 + $0xf8] sm:$0xff]  ;;  %480 = vmatpush.msra.mxu2 %v265_v0  ;;  %v280_v3 = vld [vmem:[#allocation5 + $0xf0] sm:$0xff]  ;;  %v263_v4 = vld [vmem:[#allocation5 + $0x68] sm:$0xff]  ;;  %286 = vmatpush.msra.mxu0 %v265_v0  ;;  %s347_s24 = scalar_lea.hbm %s929_s3, %s479_s27  ;;  %s240_s25 = scalar_lea.vmem [#allocation7], %s471_s1 }
  0x2b   : > { %496 = vmatpush.msra.mxu3 %v281_v2  ;;  %v279_v5 = vld [vmem:[#allocation5 + $0xe8] sm:$0xff]  ;;  %309 = vmatpush.msra.mxu1 %v281_v2  ;;  %v262_v6 = vld [vmem:[#allocation5 + $0x60] sm:$0xff]  ;;  %v261_v8 = vld [vmem:[#allocation5 + $0x58] sm:$0xff]  ;;  %s348_s26 = sshll.u32 %s240_s25, 4  ;;  %s350_s28 = sshll.u32 %s347_s24, 4  ;;  %s349_s26 = int_to_ptr.vmem [resolvable:$true] %s348_s26  ;;  %s351_s28 = int_to_ptr.hbm [resolvable:$true] %s350_s28 }
  0x2c   : > { %481 = vmatpush.msra.mxu2 %v264_v1  ;;  %287 = vmatpush.msra.mxu0 %v264_v1  ;;  %v278_v7 = vld [vmem:[#allocation5 + $0xe0] sm:$0xff]  ;;  %v277_v9 = vld [vmem:[#allocation5 + $0xd8] sm:$0xff]  ;;  %v260_v10 = vld [vmem:[#allocation5 + $0x50] sm:$0xff]  ;;  %s335_s15 = scalar_lea.sflag [#allocation4], %s866_s6  ;;  %s666_s29 = sshra.s32 %s351_s28, 4  ;;  %s667_s29 = int_to_ptr.hbm [resolvable:$true] %s666_s29 }
  0x2d   : > { %497 = vmatpush.msra.mxu3 %v280_v3  ;;  %310 = vmatpush.msra.mxu1 %v280_v3  ;;  %v276_v11 = vld [vmem:[#allocation5 + $0xd0] sm:$0xff]  ;;  %v259_v12 = vld [vmem:[#allocation5 + $0x48] sm:$0xff]  ;;  %v258_v14 = vld [vmem:[#allocation5 + $0x40] sm:$0xff]  ;;  %s668_s21 = scalar_lea.hbm %s667_s29, 16  ;;  %s672_s9 = scalar_lea.hbm %s929_s3, 32 }
  0x2e   : > { %482 = vmatpush.msra.mxu2 %v263_v4  ;;  %288 = vmatpush.msra.mxu0 %v263_v4  ;;  %v275_v13 = vld [vmem:[#allocation5 + $0xc8] sm:$0xff]  ;;  %v274_v15 = vld [vmem:[#allocation5 + $0xc0] sm:$0xff]  ;;  %v257_v16 = vld [vmem:[#allocation5 + $0x38] sm:$0xff]  ;;  %p669_p1 = scmp.ne.s32.totalorder %s667_s29, %s668_s21  ;;  %p673_p10 = scmp.lt.s32.totalorder %s667_s29, %s929_s3 }
  0x2f   : > { %498 = vmatpush.msra.mxu3 %v279_v5  ;;  %311 = vmatpush.msra.mxu1 %v279_v5  ;;  %v273_v17 = vld [vmem:[#allocation5 + $0xb8] sm:$0xff]  ;;  %v256_v18 = vld [vmem:[#allocation5 + $0x30] sm:$0xff]  ;;  %v255_v20 = vld [vmem:[#allocation5 + $0x28] sm:$0xff]  ;;  %p674_p12 = scmp.lt.s32.totalorder %s672_s9, %s668_s21 }
  0x30   : > { %483 = vmatpush.msra.mxu2 %v262_v6  ;;  %289 = vmatpush.msra.mxu0 %v262_v6  ;;  %v272_v19 = vld [vmem:[#allocation5 + $0xb0] sm:$0xff]  ;;  %v271_v21 = vld [vmem:[#allocation5 + $0xa8] sm:$0xff]  ;;  %v254_v22 = vld [vmem:[#allocation5 + $0x20] sm:$0xff]  ;;  %p670_p4 = pnand %p669_p1, %p846_p5 }
  0x31   : > { %499 = vmatpush.msra.mxu3 %v278_v7  ;;  %312 = vmatpush.msra.mxu1 %v278_v7  ;;  %v270_v23 = vld [vmem:[#allocation5 + $0xa0] sm:$0xff]  ;;  %v253_v24 = vld [vmem:[#allocation5 + $0x18] sm:$0xff]  ;;  %v252_v26 = vld [vmem:[#allocation5 + $0x10] sm:$0xff]  ;;  %p675_p13 = por %p674_p12, %p673_p10 }
  0x32   : > { %484 = vmatpush.msra.mxu2 %v261_v8  ;;  %290 = vmatpush.msra.mxu0 %v261_v8  ;;  %v269_v25 = vld [vmem:[#allocation5 + $0x98] sm:$0xff]  ;;  %v268_v27 = vld [vmem:[#allocation5 + $0x90] sm:$0xff]  ;;  %v251_v28 = vld [vmem:[#allocation5 + $0x8] sm:$0xff]  ;;  %p671_p8 = pneg %p670_p4 }
  0x33   : > { %500 = vmatpush.msra.mxu3 %v277_v9  ;;  %313 = vmatpush.msra.mxu1 %v277_v9  ;;  %v267_v29 = vld [vmem:[#allocation5 + $0x88] sm:$0xff]  ;;  %v250_v30 = vld [vmem:[#allocation5] sm:$0xff]  ;;  %v248_v32 = vld [vmem:[%s870_s19 + $0x10] sm:$0xff] }
  0x34   : > { %485 = vmatpush.msra.mxu2 %v260_v10  ;;  %291 = vmatpush.msra.mxu0 %v260_v10  ;;  %v266_v31 = vld [vmem:[#allocation5 + $0x80] sm:$0xff]  ;;  %v249_v33 = vld [vmem:[%s870_s19 + $0x18] sm:$0xff]  ;;  %v247_v35 = vld [vmem:[%s870_s19 + $0x8] sm:$0xff]  ;;  %p676_p0 = pnand %p675_p13, %p671_p8 }
  0x35   : > { %501 = vmatpush.msra.mxu3 %v276_v11  ;;  %314 = vmatpush.msra.mxu1 %v276_v11  ;;  %v246_v34 = vld [vmem:[%s870_s19] sm:$0xff] }
  0x36   : > { %486 = vmatpush.msra.mxu2 %v259_v12  ;;  %292 = vmatpush.msra.mxu0 %v259_v12  ;;  %v591_v36 = vld [vmem:[%s928_s2] ss:$0 sm:$0xff] }
  0x37   : > { %502 = vmatpush.msra.mxu3 %v275_v13  ;;  %315 = vmatpush.msra.mxu1 %v275_v13 }
  0x38   : > { %487 = vmatpush.msra.mxu2 %v258_v14  ;;  %293 = vmatpush.msra.mxu0 %v258_v14 }
  0x39   : > { %503 = vmatpush.msra.mxu3 %v274_v15  ;;  %316 = vmatpush.msra.mxu1 %v274_v15 }
  0x3a   : > { %488 = vmatpush.msra.mxu2 %v257_v16  ;;  %294 = vmatpush.msra.mxu0 %v257_v16 }
  0x3b   : > { %504 = vmatpush.msra.mxu3 %v273_v17  ;;  %317 = vmatpush.msra.mxu1 %v273_v17 }
  0x3c   : > { %489 = vmatpush.msra.mxu2 %v256_v18  ;;  %295 = vmatpush.msra.mxu0 %v256_v18 }
  0x3d   : > { %505 = vmatpush.msra.mxu3 %v272_v19  ;;  %318 = vmatpush.msra.mxu1 %v272_v19 }
  0x3e   : > { %490 = vmatpush.msra.mxu2 %v255_v20  ;;  %296 = vmatpush.msra.mxu0 %v255_v20 }
  0x3f   : > { %506 = vmatpush.msra.mxu3 %v271_v21  ;;  %319 = vmatpush.msra.mxu1 %v271_v21 }
  0x40   : > { %491 = vmatpush.msra.mxu2 %v254_v22  ;;  %297 = vmatpush.msra.mxu0 %v254_v22 }
  0x41   : > { %507 = vmatpush.msra.mxu3 %v270_v23  ;;  %320 = vmatpush.msra.mxu1 %v270_v23 }
  0x42   : > { %492 = vmatpush.msra.mxu2 %v253_v24  ;;  %298 = vmatpush.msra.mxu0 %v253_v24 }
  0x43   : > { %508 = vmatpush.msra.mxu3 %v269_v25  ;;  %321 = vmatpush.msra.mxu1 %v269_v25 }
  0x44   : > { %493 = vmatpush.msra.mxu2 %v252_v26  ;;  %299 = vmatpush.msra.mxu0 %v252_v26 }
  0x45   : > { %509 = vmatpush.msra.mxu3 %v268_v27  ;;  %322 = vmatpush.msra.mxu1 %v268_v27 }
  0x46   : > { %494 = vmatpush.msra.mxu2 %v251_v28  ;;  %300 = vmatpush.msra.mxu0 %v251_v28 }
  0x47   : > { %510 = vmatpush.msra.mxu3 %v267_v29  ;;  %323 = vmatpush.msra.mxu1 %v267_v29 }
  0x48   : > { %495 = vmatpush.msra.mxu2 %v250_v30  ;;  %301 = vmatpush.msra.mxu0 %v250_v30 }
  0x49   : > { %511 = vmatpush.msra.mxu3 %v266_v31  ;;  %305 = vmatmul.f32.vlgmr.msra.gmra.mxu2 %v248_v32 }
  0x4a   : > { %328 = vmatmul.f32.vlgmr.msra.gmra.mxu3 %v249_v33  ;;  %324 = vmatpush.msra.mxu1 %v266_v31 }
  0x4b   : > { %302 = vmatmul.f32.vlgmr.msra.gmra.mxu0 %v246_v34  ;;  %325 = vmatmul.f32.vlgmr.msra.gmra.mxu1 %v247_v35 }
  0xc8   : > { %v303_v37 = vpop.f32.mrf.mxu0  ;;  %v326_v38 = vpop.f32.mrf.mxu1 }
  0xc9   : > { %v304_v39 = vadd.f32 %v591_v36, %v303_v37 }
  0xcb   : > { %v327_v40 = vadd.f32 %v326_v38, %v304_v39 }
  0xcc   : > { %v306_v41 = vpop.f32.mrf.mxu2 }
  0xcd   : > { %v329_v42 = vpop.f32.mrf.mxu3  ;;  %v307_v43 = vadd.f32 %v591_v36, %v306_v41  ;;  %332 = vst [vmem:[%s240_s25] sm:$0xff] %v327_v40 }
  0xcf   : > { %v330_v44 = vadd.f32 %v329_v42, %v307_v43 }
  0xd1   : > { %333 = vst [vmem:[%s240_s25 + $0x8] sm:$0xff] %v330_v44 }
  0xd2   : > { %679 = shalt.err (!%p676_p0)
}
  0xd3   : > { %s745_s6 = smov 128   ;;  %s746_s1 = smov 8  }
  0xd4   : > { %518 = dma.vmem_to_hbm [thread:$0]  (%p846_p5), %s349_s26, 256, %s351_s28, %s335_s15, %s745_s6, %s745_s6, %s746_s1  }
  0xd5 PF: > { %s365_s20 = sand.u32 1, %s718_s12   ;;  %p529_p3 = pnand %p463_p11, %p816_p6 }
  0xd6   : > { %s366_s22 = scalar_lea.sflag [#allocation4], %s365_s20 }
  0xd7   : > { %p530_p7 = pneg %p529_p3 }
  0xd9   : > { %713 = dma.done.wait (%p530_p7), %s366_s22, 256  }
  0xda   : > { %715 = vsyncadd (%p530_p7), %s366_s22, 4294967040  ;;  %s20_s17 = sadd.s32 1, %s738_s17   ;;  %s939_s12 = smov %s722_s13 }
  0xdb   : > { %p17_p9 = scmp.ge.s32.totalorder %s20_s17, 4   ;;  %s940_s13 = smov %s726_s14 }
  0xdc   : > { %s941_s14 = smov %s855_s18  ;;  %s942_s15 = smov %s734_s16 }
  0xdd   : > { %s943_s16 = smov %s945_s5  ;;  %19 = sbr.rel (!%p17_p9) target bundleno = 9 (0x9), region = 85 }
  0xe2   :  { %372 = vsyncpa [#allocation3], 1 }
  0xe3   :  { %374 = vsyncpa [#allocation3 + $0x1], 1 }
  0xe4   :  { %375 = vsyncpa [#allocation6], 1 }
  0xe5   :  { %376 = vsyncpa [#allocation4], 1 }
  0xe6   :  { %378 = vsyncpa [#allocation4 + $0x1], 1 }

</bundles_post_ra>
